<compile_context>
chip_gen: v5e
topology: v5e:2x2
jax: 0.10.0
libtpu: 0.0.40
codegen_flags: <defaults>
</compile_context>

<pallas_src>
import math
from functools import partial

import numpy as np

import jax
import jax.numpy as jnp
from jax.experimental import pallas as pl
from jax.experimental.pallas import tpu as pltpu

_MIB = 1024 * 1024


def _softmax(s, *, approx):
    m = jnp.max(s, axis=-1, keepdims=True)
    e = jnp.exp(s - m)
    den = jnp.sum(e, axis=-1, keepdims=True)
    if approx:
        # EUP approx reciprocal -> off the VALU critical path (internal use only).
        return e * pl.reciprocal(den, approx=True)
    return e / den


def _layernorm(x, gamma, beta, eps=1e-5):
    mu = jnp.mean(x, axis=-1, keepdims=True)
    xc = x - mu
    var = jnp.mean(xc * xc, axis=-1, keepdims=True)
    return xc * jax.lax.rsqrt(var + eps) * gamma + beta


def _encoder_layer3_kernel(q1t_ref, q2t_ref, kv1_ref, kv2_ref,
                           w1t_ref, b1_ref, w2t_ref, b2_ref,
                           g1_ref, be1_ref, g2_ref, be2_ref,
                           out_ref, attn_ref):
    q1t = q1t_ref[...]                      # (bt, tq, D) bf16
    q2t = q2t_ref[...]                      # (bt, tq, D) bf16
    kv1 = kv1_ref[...]                      # (bt, L, D) bf16  == feat2 (K1/V1)
    kv2 = kv2_ref[...]                      # (bt, L, D) bf16  == feat1 (K2/V2)
    bt, tq, d = q1t.shape

    # 1/sqrt(d) folded into the (tq, D) query tile, straight on the bf16 copy.
    scale = jnp.asarray(1.0 / math.sqrt(d), dtype=q1t.dtype)
    q1s = q1t * scale
    q2s = q2t * scale

    # attention1(q1, k1=q2, v1=q2) -- bf16 MXU operands, f32 accumulation.
    s1 = jnp.einsum('bqd,bkd->bqk', q1s, kv1,
                    preferred_element_type=jnp.float32)
    a1 = _softmax(s1, approx=True)
    x = jnp.einsum('bqk,bkd->bqd', a1.astype(jnp.bfloat16), kv1,
                   preferred_element_type=jnp.float32)

    # attention2(q2, k2=q1, v2=q1) -- its attn is the returned model output,
    # so use the exact reciprocal (rows sum to 1).
    s2 = jnp.einsum('bqd,bkd->bqk', q2s, kv2,
                    preferred_element_type=jnp.float32)
    a2 = _softmax(s2, approx=False)
    x1 = jnp.einsum('bqk,bkd->bqd', a2.astype(jnp.bfloat16), kv2,
                    preferred_element_type=jnp.float32)

    # dropout (inference) == identity
    y = x + x1                              # (bt, tq, D) f32

    # conv1 (1x1) -> relu -> conv2 (1x1), folded into the q-tile: the f32
    # hidden is only (bt*tq, d_ff).  Weights are pre-transposed bf16 (no
    # in-kernel .T).
    yb = y.reshape(bt * tq, d).astype(jnp.bfloat16)
    h = jnp.dot(yb, w1t_ref[...], preferred_element_type=jnp.float32) + b1_ref[...]
    h = jnp.maximum(h, 0.0)
    y2 = jnp.dot(h.astype(jnp.bfloat16), w2t_ref[...],
                 preferred_element_type=jnp.float32) + b2_ref[...]
    y2 = y2.reshape(bt, tq, d)

    # out = norm1(q1) + norm2(y2); LayerNorm stats in f32.
    ln1 = _layernorm(q1t.astype(jnp.float32), g1_ref[...], be1_ref[...])
    ln2 = _layernorm(y2, g2_ref[...], be2_ref[...])

    out_ref[...] = (ln1 + ln2).astype(out_ref.dtype)
    attn_ref[...] = a2.astype(attn_ref.dtype)


def _vmem_budget_bytes():
    # Per-generation scoped-VMEM budget: ~75% of physical capacity
    # (~96 MiB on v5e/v6e's 128 MiB, ~48 MiB on v7x's 64 MiB).
    try:
        cap = int(pltpu.get_tpu_info().vmem_capacity_bytes)
    except Exception:
        cap = 64 * _MIB  # conservative (v7x-sized) fallback
    return (cap * 3) // 4


def _vmem_estimate_bytes(bt, tq, L, D, d_ff, attn_bytes):
    bf16, f32 = 2, 4
    # Pipeline blocks are double-buffered by BlockSpec (including the
    # constant-index weight blocks, kept on the default double buffer).
    pipe = 2 * (2 * bt * tq * D * bf16          # q1/q2 query tiles
                + 2 * bt * L * D * bf16         # full-L K/V blocks
                + bt * tq * D * f32             # out block
                + bt * tq * L * attn_bytes      # attn block
                + 2 * D * d_ff * bf16           # w1t / w2t
                + (2 * d_ff + 8 * D) * f32)     # biases / LN params (rough)
    # Live in-kernel intermediates (rough upper bound).
    live = (2 * bt * tq * L * (f32 + bf16)      # scores/probs (+ bf16 copies)
            + 5 * bt * tq * D * f32             # x, x1, y, y2, LN temps
            + bt * tq * d_ff * (f32 + bf16))    # FFN hidden (+ bf16 copy)
    return pipe + live


def _pick_tiles(B, L, D, d_ff, attn_bytes):
    """Choose (bt, tq, vmem_limit_bytes) for the (B//bt, L//tq) grid."""
    budget = _vmem_budget_bytes()

    def divisors_desc(n):
        return [d for d in range(n, 0, -1) if n % d == 0]

    # Query-tile candidates: the full L, or divisors of L that are multiples
    # of 8, capped at 512 -- keeps the quadratic (tq, L) score tile bounded
    # while still feeding the 256x256 MXUs on v6e/v7x with >=256-row matmuls
    # when L allows.
    tq_cands = [t for t in divisors_desc(L)
                if t <= 512 and (t == L or t % 8 == 0)]
    if not tq_cands:
        tq_cands = [L]

    choices = []
    for tq in tq_cands:
        for bt in divisors_desc(B):
            est = _vmem_estimate_bytes(bt, tq, L, D, d_ff, attn_bytes)
            steps = (B // bt) * (L // tq)
            choices.append((tq, bt, est, steps))

    picked = None
    # Prefer >=4 (even) grid steps so v7x's two TensorCores each get >=2 steps
    # and double-buffering has something to overlap; relax for tiny problems.
    # Among feasible choices, maximize per-step MXU rows (bt * tq).
    for min_steps, need_even in ((4, True), (4, False), (2, False), (1, False)):
        ok = [c for c in choices
              if c[2] <= budget and c[3] >= min_steps
              and (not need_even or c[3] % 2 == 0)]
        if ok:
            picked = max(ok, key=lambda c: c[0] * c[1])
            break
    if picked is None:
        # Nothing fits the budget: fall back to the smallest footprint.
        picked = min(choices, key=lambda c: c[2])

    tq, bt, _, _ = picked
    return bt, tq, budget


@partial(jax.jit, static_argnames=("attn_dtype",))
def encoder_layer3(feat1, feat2, params, *, attn_dtype=jnp.float32):
    """feat1, feat2: (B, d_model, L) float32 (PyTorch NCL layout)."""
    B, D, L = feat1.shape
    d_ff = params["w1"].shape[0]

    # Materialize .permute(0, 2, 1) + bf16 cast as standalone XLA ops so the
    # kernel's input DMAs are contiguous streaming reads (no strided
    # transpose-fused fetch) and the two big streamed inputs cost half the
    # HBM->VMEM bytes.
    q1 = jnp.transpose(feat1, (0, 2, 1)).astype(jnp.bfloat16)   # (B, L, D)
    q2 = jnp.transpose(feat2, (0, 2, 1)).astype(jnp.bfloat16)

    # Conv1d(k=1) weights squeezed & pre-transposed once (no in-kernel .T),
    # shipped as bf16 MXU operands; biases / LN params stay f32.
    w1t = params["w1"].T.astype(jnp.bfloat16)          # (D, d_ff)
    w2t = params["w2"].T.astype(jnp.bfloat16)          # (d_ff, D)
    b1 = params["b1"].reshape(1, d_ff)
    b2 = params["b2"].reshape(1, D)
    g1 = params["g1"].reshape(1, D)
    be1 = params["be1"].reshape(1, D)
    g2 = params["g2"].reshape(1, D)
    be2 = params["be2"].reshape(1, D)

    attn_bytes = np.dtype(attn_dtype).itemsize
    bt, tq, vmem_limit = _pick_tiles(B, L, D, d_ff, attn_bytes)
    grid = (B // bt, L // tq)

    qtile_spec = pl.BlockSpec((bt, tq, D), lambda b, q: (b, q, 0))
    # Full-length K/V blocks: the index_map ignores q, so Pallas re-fetches
    # them only when the batch index changes (q is the fastest grid axis).
    kv_spec = pl.BlockSpec((bt, L, D), lambda b, q: (b, 0, 0))
    const2d = lambda shape: pl.BlockSpec(shape, lambda b, q: (0, 0))

    out, attn = pl.pallas_call(
        _encoder_layer3_kernel,
        grid=grid,
        in_specs=[
            qtile_spec,                 # q1 query tile
            qtile_spec,                 # q2 query tile
            kv_spec,                    # K1/V1 = q2 (full L)
            kv_spec,                    # K2/V2 = q1 (full L)
            const2d((D, d_ff)),         # w1t
            const2d((1, d_ff)),         # b1
            const2d((d_ff, D)),         # w2t
            const2d((1, D)),            # b2
            const2d((1, D)),            # g1
            const2d((1, D)),            # be1
            const2d((1, D)),            # g2
            const2d((1, D)),            # be2
        ],
        out_specs=(
            pl.BlockSpec((bt, tq, D), lambda b, q: (b, q, 0)),
            # attn last dim is full L -> lane-dense once L >= 128 at prod sizes.
            pl.BlockSpec((bt, tq, L), lambda b, q: (b, q, 0)),
        ),
        out_shape=(
            jax.ShapeDtypeStruct((B, L, D), jnp.float32),
            jax.ShapeDtypeStruct((B, L, L), attn_dtype),
        ),
        compiler_params=pltpu.CompilerParams(
            dimension_semantics=("parallel", "parallel"),
            vmem_limit_bytes=vmem_limit,
        ),
    )(q1, q2, q2, q1, w1t, b1, w2t, b2, g1, be1, g2, be2)
    return out, attn


def init_params(key, d_model, d_ff):
    k1, k2, k3, k4 = jax.random.split(key, 4)
    return {
        # Conv1d(d_model -> d_ff, k=1): weight (d_ff, d_model, 1) -> squeezed
        "w1": 0.02 * jax.random.normal(k1, (d_ff, d_model), jnp.float32),
        "b1": 0.01 * jax.random.normal(k2, (d_ff,), jnp.float32),
        # Conv1d(d_ff -> d_model, k=1)
        "w2": 0.02 * jax.random.normal(k3, (d_model, d_ff), jnp.float32),
        "b2": 0.01 * jax.random.normal(k4, (d_model,), jnp.float32),
        # LayerNorm(d_model) x2 (PyTorch default init)
        "g1": jnp.ones((d_model,), jnp.float32),
        "be1": jnp.zeros((d_model,), jnp.float32),
        "g2": jnp.ones((d_model,), jnp.float32),
        "be2": jnp.zeros((d_model,), jnp.float32),
    }


def _reference(feat1, feat2, params):
    """Pure-JAX f32 reference of the same forward pass."""
    q1 = jnp.transpose(feat1, (0, 2, 1))
    q2 = jnp.transpose(feat2, (0, 2, 1))
    d = q1.shape[-1]
    scale = 1.0 / math.sqrt(d)
    s1 = jnp.einsum('bqd,bkd->bqk', q1, q2) * scale
    a1 = jax.nn.softmax(s1, axis=-1)
    x = jnp.einsum('bqk,bkd->bqd', a1, q2)
    s2 = jnp.einsum('bqd,bkd->bqk', q2, q1) * scale
    a2 = jax.nn.softmax(s2, axis=-1)
    x1 = jnp.einsum('bqk,bkd->bqd', a2, q1)
    y = x + x1
    h = jax.nn.relu(jnp.einsum('bld,fd->blf', y, params["w1"]) + params["b1"])
    y2 = jnp.einsum('blf,df->bld', h, params["w2"]) + params["b2"]

    def ln(v, g, b):
        mu = jnp.mean(v, -1, keepdims=True)
        var = jnp.mean((v - mu) ** 2, -1, keepdims=True)
        return (v - mu) * jax.lax.rsqrt(var + 1e-5) * g + b

    out = ln(q1, params["g1"], params["be1"]) + ln(y2, params["g2"], params["be2"])
    return out, a2


if __name__ == "__main__":
    B, d_model, L = 2, 32, 8
    d_ff = 4 * d_model  # matches `d_ff or 4 * d_model`

    key = jax.random.PRNGKey(0)
    kf1, kf2, kp = jax.random.split(key, 3)
    feat1 = jax.random.normal(kf1, (B, d_model, L), jnp.float32)
    feat2 = jax.random.normal(kf2, (B, d_model, L), jnp.float32)
    params = init_params(kp, d_model, d_ff)

    out, attn = encoder_layer3(feat1, feat2, params)
    jax.block_until_ready((out, attn))

    assert out.shape == (B, L, d_model)
    assert attn.shape == (B, L, L)

    # Loose tolerance: kernel streams bf16 inputs and runs MXU matmuls in bf16
    # (f32 accumulation).
    ref_out, ref_attn = _reference(feat1, feat2, params)
    err_out = float(jnp.max(jnp.abs(out - ref_out)))
    err_attn = float(jnp.max(jnp.abs(attn - ref_attn)))
    assert err_out < 0.2, f"out mismatch, max abs err {err_out}"
    assert err_attn < 0.05, f"attn mismatch, max abs err {err_attn}"

    print("KERNEL_OK")
</pallas_src>

<mosaic_0001>
module attributes {stable_mosaic.version = 11 : i64} {
  func.func @_encoder_layer3_kernel(%arg0: i32, %arg1: i32, %arg2: memref<1x8x32xbf16, #tpu.memory_space<vmem>>, %arg3: memref<1x8x32xbf16, #tpu.memory_space<vmem>>, %arg4: memref<1x8x32xbf16, #tpu.memory_space<vmem>>, %arg5: memref<1x8x32xbf16, #tpu.memory_space<vmem>>, %arg6: memref<32x128xbf16, #tpu.memory_space<vmem>>, %arg7: memref<1x128xf32, #tpu.memory_space<vmem>>, %arg8: memref<128x32xbf16, #tpu.memory_space<vmem>>, %arg9: memref<1x32xf32, #tpu.memory_space<vmem>>, %arg10: memref<1x32xf32, #tpu.memory_space<vmem>>, %arg11: memref<1x32xf32, #tpu.memory_space<vmem>>, %arg12: memref<1x32xf32, #tpu.memory_space<vmem>>, %arg13: memref<1x32xf32, #tpu.memory_space<vmem>>, %arg14: memref<1x8x32xf32, #tpu.memory_space<vmem>>, %arg15: memref<1x8x8xf32, #tpu.memory_space<vmem>>) attributes {dimension_semantics = [#tpu.dimension_semantics<parallel>, #tpu.dimension_semantics<parallel>], iteration_bounds = array<i64: 2, 1>, scalar_prefetch = 0 : i64, scratch_operands = 0 : i64, tpu.core_type = #tpu.core_type<tc>, window_params = [{transform_indices = @transform_0, window_bounds = array<i64: 1, 8, 32>}, {transform_indices = @transform_1, window_bounds = array<i64: 1, 8, 32>}, {transform_indices = @transform_2, window_bounds = array<i64: 1, 8, 32>}, {transform_indices = @transform_3, window_bounds = array<i64: 1, 8, 32>}, {pipeline_mode = #tpu.pipeline_mode<synchronous>, transform_indices = @transform_4, window_bounds = array<i64: 32, 128>}, {pipeline_mode = #tpu.pipeline_mode<synchronous>, transform_indices = @transform_5, window_bounds = array<i64: 1, 128>}, {pipeline_mode = #tpu.pipeline_mode<synchronous>, transform_indices = @transform_6, window_bounds = array<i64: 128, 32>}, {pipeline_mode = #tpu.pipeline_mode<synchronous>, transform_indices = @transform_7, window_bounds = array<i64: 1, 32>}, {pipeline_mode = #tpu.pipeline_mode<synchronous>, transform_indices = @transform_8, window_bounds = array<i64: 1, 32>}, {pipeline_mode = #tpu.pipeline_mode<synchronous>, transform_indices = @transform_9, window_bounds = array<i64: 1, 32>}, {pipeline_mode = #tpu.pipeline_mode<synchronous>, transform_indices = @transform_10, window_bounds = array<i64: 1, 32>}, {pipeline_mode = #tpu.pipeline_mode<synchronous>, transform_indices = @transform_11, window_bounds = array<i64: 1, 32>}, {transform_indices = @transform_12, window_bounds = array<i64: 1, 8, 32>}, {transform_indices = @transform_13, window_bounds = array<i64: 1, 8, 8>}]} {
    %c0 = arith.constant 0 : index
    %c0_0 = arith.constant 0 : index
    %c0_1 = arith.constant 0 : index
    %0 = vector.load %arg2[%c0, %c0_0, %c0_1] : memref<1x8x32xbf16, #tpu.memory_space<vmem>>, vector<1x8x32xbf16>
    %c0_2 = arith.constant 0 : index
    %c0_3 = arith.constant 0 : index
    %c0_4 = arith.constant 0 : index
    %1 = vector.load %arg3[%c0_2, %c0_3, %c0_4] : memref<1x8x32xbf16, #tpu.memory_space<vmem>>, vector<1x8x32xbf16>
    %c0_5 = arith.constant 0 : index
    %c0_6 = arith.constant 0 : index
    %c0_7 = arith.constant 0 : index
    %2 = vector.load %arg4[%c0_5, %c0_6, %c0_7] : memref<1x8x32xbf16, #tpu.memory_space<vmem>>, vector<1x8x32xbf16>
    %c0_8 = arith.constant 0 : index
    %c0_9 = arith.constant 0 : index
    %c0_10 = arith.constant 0 : index
    %3 = vector.load %arg5[%c0_8, %c0_9, %c0_10] : memref<1x8x32xbf16, #tpu.memory_space<vmem>>, vector<1x8x32xbf16>
    %cst = arith.constant 1.767580e-01 : bf16
    %4 = vector.broadcast %cst : bf16 to vector<1x8x32xbf16>
    %5 = arith.mulf %0, %4 : vector<1x8x32xbf16>
    %cst_11 = arith.constant 1.767580e-01 : bf16
    %6 = vector.broadcast %cst_11 : bf16 to vector<1x8x32xbf16>
    %7 = arith.mulf %1, %6 : vector<1x8x32xbf16>
    "tpu.trace_start"() <{level = 10 : i32, message = "bqd,bkd->bqk"}> : () -> ()
    %cst_12 = arith.constant dense<0.000000e+00> : vector<1x8x8xf32>
    %8 = tpu.matmul %5, %2, %cst_12 {dimension_numbers = #tpu.dot_dimension_numbers<[2], [2], [1], [1], [0, 0, 0, 1, 1, 1], [0], [0]>} : vector<1x8x32xbf16>, vector<1x8x32xbf16>, vector<1x8x8xf32> -> vector<1x8x8xf32>
    "tpu.trace_stop"() : () -> ()
    %cst_13 = arith.constant dense<0xFF800000> : vector<1x8xf32>
    %9 = vector.multi_reduction <maximumf>, %8, %cst_13 [2] : vector<1x8x8xf32> to vector<1x8xf32>
    %10 = vector.shape_cast %9 : vector<1x8xf32> to vector<1x8x1xf32>
    %11 = vector.broadcast %10 : vector<1x8x1xf32> to vector<1x8x8xf32>
    %12 = arith.subf %8, %11 : vector<1x8x8xf32>
    %13 = math.exp %12 : vector<1x8x8xf32>
    %cst_14 = arith.constant dense<0.000000e+00> : vector<1x8xf32>
    %14 = vector.multi_reduction <add>, %13, %cst_14 [2] : vector<1x8x8xf32> to vector<1x8xf32>
    %15 = vector.shape_cast %14 : vector<1x8xf32> to vector<1x8x1xf32>
    %16 = tpu.reciprocal %15 {approx = true} : vector<1x8x1xf32> -> vector<1x8x1xf32>
    %17 = vector.broadcast %16 : vector<1x8x1xf32> to vector<1x8x8xf32>
    %18 = arith.mulf %13, %17 : vector<1x8x8xf32>
    %19 = arith.truncf %18 : vector<1x8x8xf32> to vector<1x8x8xbf16>
    "tpu.trace_start"() <{level = 10 : i32, message = "bqk,bkd->bqd"}> : () -> ()
    %cst_15 = arith.constant dense<0.000000e+00> : vector<1x8x32xf32>
    %20 = tpu.matmul %19, %2, %cst_15 {dimension_numbers = #tpu.dot_dimension_numbers<[2], [1], [1], [2], [0, 0, 0, 1, 1, 2], [0], [0]>} : vector<1x8x8xbf16>, vector<1x8x32xbf16>, vector<1x8x32xf32> -> vector<1x8x32xf32>
    "tpu.trace_stop"() : () -> ()
    "tpu.trace_start"() <{level = 10 : i32, message = "bqd,bkd->bqk"}> : () -> ()
    %cst_16 = arith.constant dense<0.000000e+00> : vector<1x8x8xf32>
    %21 = tpu.matmul %7, %3, %cst_16 {dimension_numbers = #tpu.dot_dimension_numbers<[2], [2], [1], [1], [0, 0, 0, 1, 1, 1], [0], [0]>} : vector<1x8x32xbf16>, vector<1x8x32xbf16>, vector<1x8x8xf32> -> vector<1x8x8xf32>
    "tpu.trace_stop"() : () -> ()
    %cst_17 = arith.constant dense<0xFF800000> : vector<1x8xf32>
    %22 = vector.multi_reduction <maximumf>, %21, %cst_17 [2] : vector<1x8x8xf32> to vector<1x8xf32>
    %23 = vector.shape_cast %22 : vector<1x8xf32> to vector<1x8x1xf32>
    %24 = vector.broadcast %23 : vector<1x8x1xf32> to vector<1x8x8xf32>
    %25 = arith.subf %21, %24 : vector<1x8x8xf32>
    %26 = math.exp %25 : vector<1x8x8xf32>
    %cst_18 = arith.constant dense<0.000000e+00> : vector<1x8xf32>
    %27 = vector.multi_reduction <add>, %26, %cst_18 [2] : vector<1x8x8xf32> to vector<1x8xf32>
    %28 = vector.shape_cast %27 : vector<1x8xf32> to vector<1x8x1xf32>
    %29 = vector.broadcast %28 : vector<1x8x1xf32> to vector<1x8x8xf32>
    %30 = arith.divf %26, %29 : vector<1x8x8xf32>
    %31 = arith.truncf %30 : vector<1x8x8xf32> to vector<1x8x8xbf16>
    "tpu.trace_start"() <{level = 10 : i32, message = "bqk,bkd->bqd"}> : () -> ()
    %cst_19 = arith.constant dense<0.000000e+00> : vector<1x8x32xf32>
    %32 = tpu.matmul %31, %3, %cst_19 {dimension_numbers = #tpu.dot_dimension_numbers<[2], [1], [1], [2], [0, 0, 0, 1, 1, 2], [0], [0]>} : vector<1x8x8xbf16>, vector<1x8x32xbf16>, vector<1x8x32xf32> -> vector<1x8x32xf32>
    "tpu.trace_stop"() : () -> ()
    %33 = arith.addf %20, %32 : vector<1x8x32xf32>
    %34 = vector.shape_cast %33 : vector<1x8x32xf32> to vector<8x32xf32>
    %35 = arith.truncf %34 : vector<8x32xf32> to vector<8x32xbf16>
    %c0_20 = arith.constant 0 : index
    %c0_21 = arith.constant 0 : index
    %36 = vector.load %arg6[%c0_20, %c0_21] : memref<32x128xbf16, #tpu.memory_space<vmem>>, vector<32x128xbf16>
    %cst_22 = arith.constant dense<0.000000e+00> : vector<8x128xf32>
    %37 = tpu.matmul %35, %36, %cst_22 {dimension_numbers = #tpu.dot_dimension_numbers<[1], [0], [0], [1], [0, 0, 1, 1], [], []>} : vector<8x32xbf16>, vector<32x128xbf16>, vector<8x128xf32> -> vector<8x128xf32>
    %c0_23 = arith.constant 0 : index
    %c0_24 = arith.constant 0 : index
    %38 = vector.load %arg7[%c0_23, %c0_24] : memref<1x128xf32, #tpu.memory_space<vmem>>, vector<1x128xf32>
    %39 = vector.broadcast %38 : vector<1x128xf32> to vector<8x128xf32>
    %40 = arith.addf %37, %39 : vector<8x128xf32>
    %cst_25 = arith.constant 0.000000e+00 : f32
    %41 = vector.broadcast %cst_25 : f32 to vector<8x128xf32>
    %42 = arith.maximumf %40, %41 : vector<8x128xf32>
    %43 = arith.truncf %42 : vector<8x128xf32> to vector<8x128xbf16>
    %c0_26 = arith.constant 0 : index
    %c0_27 = arith.constant 0 : index
    %44 = vector.load %arg8[%c0_26, %c0_27] : memref<128x32xbf16, #tpu.memory_space<vmem>>, vector<128x32xbf16>
    %cst_28 = arith.constant dense<0.000000e+00> : vector<8x32xf32>
    %45 = tpu.matmul %43, %44, %cst_28 {dimension_numbers = #tpu.dot_dimension_numbers<[1], [0], [0], [1], [0, 0, 1, 1], [], []>} : vector<8x128xbf16>, vector<128x32xbf16>, vector<8x32xf32> -> vector<8x32xf32>
    %c0_29 = arith.constant 0 : index
    %c0_30 = arith.constant 0 : index
    %46 = vector.load %arg9[%c0_29, %c0_30] : memref<1x32xf32, #tpu.memory_space<vmem>>, vector<1x32xf32>
    %47 = vector.broadcast %46 : vector<1x32xf32> to vector<8x32xf32>
    %48 = arith.addf %45, %47 : vector<8x32xf32>
    %49 = vector.shape_cast %48 : vector<8x32xf32> to vector<1x8x32xf32>
    %50 = arith.extf %0 : vector<1x8x32xbf16> to vector<1x8x32xf32>
    %c0_31 = arith.constant 0 : index
    %c0_32 = arith.constant 0 : index
    %51 = vector.load %arg10[%c0_31, %c0_32] : memref<1x32xf32, #tpu.memory_space<vmem>>, vector<1x32xf32>
    %c0_33 = arith.constant 0 : index
    %c0_34 = arith.constant 0 : index
    %52 = vector.load %arg11[%c0_33, %c0_34] : memref<1x32xf32, #tpu.memory_space<vmem>>, vector<1x32xf32>
    %cst_35 = arith.constant dense<0.000000e+00> : vector<1x8xf32>
    %53 = vector.multi_reduction <add>, %50, %cst_35 [2] : vector<1x8x32xf32> to vector<1x8xf32>
    %54 = vector.shape_cast %53 : vector<1x8xf32> to vector<1x8x1xf32>
    %cst_36 = arith.constant 3.200000e+01 : f32
    %55 = vector.broadcast %cst_36 : f32 to vector<1x8x1xf32>
    %56 = arith.divf %54, %55 : vector<1x8x1xf32>
    %57 = vector.broadcast %56 : vector<1x8x1xf32> to vector<1x8x32xf32>
    %58 = arith.subf %50, %57 : vector<1x8x32xf32>
    %59 = arith.mulf %58, %58 : vector<1x8x32xf32>
    %cst_37 = arith.constant dense<0.000000e+00> : vector<1x8xf32>
    %60 = vector.multi_reduction <add>, %59, %cst_37 [2] : vector<1x8x32xf32> to vector<1x8xf32>
    %61 = vector.shape_cast %60 : vector<1x8xf32> to vector<1x8x1xf32>
    %cst_38 = arith.constant 3.200000e+01 : f32
    %62 = vector.broadcast %cst_38 : f32 to vector<1x8x1xf32>
    %63 = arith.divf %61, %62 : vector<1x8x1xf32>
    %cst_39 = arith.constant 9.99999974E-6 : f32
    %64 = vector.broadcast %cst_39 : f32 to vector<1x8x1xf32>
    %65 = arith.addf %63, %64 : vector<1x8x1xf32>
    %66 = math.rsqrt %65 : vector<1x8x1xf32>
    %67 = vector.broadcast %66 : vector<1x8x1xf32> to vector<1x8x32xf32>
    %68 = arith.mulf %58, %67 : vector<1x8x32xf32>
    %69 = vector.shape_cast %51 : vector<1x32xf32> to vector<1x1x32xf32>
    %70 = vector.broadcast %69 : vector<1x1x32xf32> to vector<1x8x32xf32>
    %71 = arith.mulf %68, %70 : vector<1x8x32xf32>
    %72 = vector.shape_cast %52 : vector<1x32xf32> to vector<1x1x32xf32>
    %73 = vector.broadcast %72 : vector<1x1x32xf32> to vector<1x8x32xf32>
    %74 = arith.addf %71, %73 : vector<1x8x32xf32>
    %c0_40 = arith.constant 0 : index
    %c0_41 = arith.constant 0 : index
    %75 = vector.load %arg12[%c0_40, %c0_41] : memref<1x32xf32, #tpu.memory_space<vmem>>, vector<1x32xf32>
    %c0_42 = arith.constant 0 : index
    %c0_43 = arith.constant 0 : index
    %76 = vector.load %arg13[%c0_42, %c0_43] : memref<1x32xf32, #tpu.memory_space<vmem>>, vector<1x32xf32>
    %cst_44 = arith.constant dense<0.000000e+00> : vector<1x8xf32>
    %77 = vector.multi_reduction <add>, %49, %cst_44 [2] : vector<1x8x32xf32> to vector<1x8xf32>
    %78 = vector.shape_cast %77 : vector<1x8xf32> to vector<1x8x1xf32>
    %cst_45 = arith.constant 3.200000e+01 : f32
    %79 = vector.broadcast %cst_45 : f32 to vector<1x8x1xf32>
    %80 = arith.divf %78, %79 : vector<1x8x1xf32>
    %81 = vector.broadcast %80 : vector<1x8x1xf32> to vector<1x8x32xf32>
    %82 = arith.subf %49, %81 : vector<1x8x32xf32>
    %83 = arith.mulf %82, %82 : vector<1x8x32xf32>
    %cst_46 = arith.constant dense<0.000000e+00> : vector<1x8xf32>
    %84 = vector.multi_reduction <add>, %83, %cst_46 [2] : vector<1x8x32xf32> to vector<1x8xf32>
    %85 = vector.shape_cast %84 : vector<1x8xf32> to vector<1x8x1xf32>
    %cst_47 = arith.constant 3.200000e+01 : f32
    %86 = vector.broadcast %cst_47 : f32 to vector<1x8x1xf32>
    %87 = arith.divf %85, %86 : vector<1x8x1xf32>
    %cst_48 = arith.constant 9.99999974E-6 : f32
    %88 = vector.broadcast %cst_48 : f32 to vector<1x8x1xf32>
    %89 = arith.addf %87, %88 : vector<1x8x1xf32>
    %90 = math.rsqrt %89 : vector<1x8x1xf32>
    %91 = vector.broadcast %90 : vector<1x8x1xf32> to vector<1x8x32xf32>
    %92 = arith.mulf %82, %91 : vector<1x8x32xf32>
    %93 = vector.shape_cast %75 : vector<1x32xf32> to vector<1x1x32xf32>
    %94 = vector.broadcast %93 : vector<1x1x32xf32> to vector<1x8x32xf32>
    %95 = arith.mulf %92, %94 : vector<1x8x32xf32>
    %96 = vector.shape_cast %76 : vector<1x32xf32> to vector<1x1x32xf32>
    %97 = vector.broadcast %96 : vector<1x1x32xf32> to vector<1x8x32xf32>
    %98 = arith.addf %95, %97 : vector<1x8x32xf32>
    %99 = arith.addf %74, %98 : vector<1x8x32xf32>
    %c0_49 = arith.constant 0 : index
    %c0_50 = arith.constant 0 : index
    %c0_51 = arith.constant 0 : index
    %100 = vector.load %arg14[%c0_49, %c0_50, %c0_51] : memref<1x8x32xf32, #tpu.memory_space<vmem>>, vector<1x8x32xf32>
    tpu.vector_store %arg14[%c0_49, %c0_50, %c0_51], %99 {strides = array<i32>} : memref<1x8x32xf32, #tpu.memory_space<vmem>>, vector<1x8x32xf32>,
    %c0_52 = arith.constant 0 : index
    %c0_53 = arith.constant 0 : index
    %c0_54 = arith.constant 0 : index
    %101 = vector.load %arg15[%c0_52, %c0_53, %c0_54] : memref<1x8x8xf32, #tpu.memory_space<vmem>>, vector<1x8x8xf32>
    tpu.vector_store %arg15[%c0_52, %c0_53, %c0_54], %30 {strides = array<i32>} : memref<1x8x8xf32, #tpu.memory_space<vmem>>, vector<1x8x8xf32>,
    return
  }
  func.func @transform_0(%arg0: i32, %arg1: i32) -> (i32, i32, i32) {
    %c0_i32 = arith.constant 0 : i32
    %c0_i32_0 = arith.constant 0 : i32
    return %arg0, %arg1, %c0_i32 : i32, i32, i32
  }
  func.func @transform_1(%arg0: i32, %arg1: i32) -> (i32, i32, i32) {
    %c0_i32 = arith.constant 0 : i32
    %c0_i32_0 = arith.constant 0 : i32
    return %arg0, %arg1, %c0_i32 : i32, i32, i32
  }
  func.func @transform_2(%arg0: i32, %arg1: i32) -> (i32, i32, i32) {
    %c0_i32 = arith.constant 0 : i32
    %c0_i32_0 = arith.constant 0 : i32
    %c0_i32_1 = arith.constant 0 : i32
    return %arg0, %c0_i32, %c0_i32_0 : i32, i32, i32
  }
  func.func @transform_3(%arg0: i32, %arg1: i32) -> (i32, i32, i32) {
    %c0_i32 = arith.constant 0 : i32
    %c0_i32_0 = arith.constant 0 : i32
    %c0_i32_1 = arith.constant 0 : i32
    return %arg0, %c0_i32, %c0_i32_0 : i32, i32, i32
  }
  func.func @transform_4(%arg0: i32, %arg1: i32) -> (i32, i32) {
    %c0_i32 = arith.constant 0 : i32
    %c0_i32_0 = arith.constant 0 : i32
    %c0_i32_1 = arith.constant 0 : i32
    return %c0_i32, %c0_i32_0 : i32, i32
  }
  func.func @transform_5(%arg0: i32, %arg1: i32) -> (i32, i32) {
    %c0_i32 = arith.constant 0 : i32
    %c0_i32_0 = arith.constant 0 : i32
    %c0_i32_1 = arith.constant 0 : i32
    return %c0_i32, %c0_i32_0 : i32, i32
  }
  func.func @transform_6(%arg0: i32, %arg1: i32) -> (i32, i32) {
    %c0_i32 = arith.constant 0 : i32
    %c0_i32_0 = arith.constant 0 : i32
    %c0_i32_1 = arith.constant 0 : i32
    return %c0_i32, %c0_i32_0 : i32, i32
  }
  func.func @transform_7(%arg0: i32, %arg1: i32) -> (i32, i32) {
    %c0_i32 = arith.constant 0 : i32
    %c0_i32_0 = arith.constant 0 : i32
    %c0_i32_1 = arith.constant 0 : i32
    return %c0_i32, %c0_i32_0 : i32, i32
  }
  func.func @transform_8(%arg0: i32, %arg1: i32) -> (i32, i32) {
    %c0_i32 = arith.constant 0 : i32
    %c0_i32_0 = arith.constant 0 : i32
    %c0_i32_1 = arith.constant 0 : i32
    return %c0_i32, %c0_i32_0 : i32, i32
  }
  func.func @transform_9(%arg0: i32, %arg1: i32) -> (i32, i32) {
    %c0_i32 = arith.constant 0 : i32
    %c0_i32_0 = arith.constant 0 : i32
    %c0_i32_1 = arith.constant 0 : i32
    return %c0_i32, %c0_i32_0 : i32, i32
  }
  func.func @transform_10(%arg0: i32, %arg1: i32) -> (i32, i32) {
    %c0_i32 = arith.constant 0 : i32
    %c0_i32_0 = arith.constant 0 : i32
    %c0_i32_1 = arith.constant 0 : i32
    return %c0_i32, %c0_i32_0 : i32, i32
  }
  func.func @transform_11(%arg0: i32, %arg1: i32) -> (i32, i32) {
    %c0_i32 = arith.constant 0 : i32
    %c0_i32_0 = arith.constant 0 : i32
    %c0_i32_1 = arith.constant 0 : i32
    return %c0_i32, %c0_i32_0 : i32, i32
  }
  func.func @transform_12(%arg0: i32, %arg1: i32) -> (i32, i32, i32) {
    %c0_i32 = arith.constant 0 : i32
    %c0_i32_0 = arith.constant 0 : i32
    return %arg0, %arg1, %c0_i32 : i32, i32, i32
  }
  func.func @transform_13(%arg0: i32, %arg1: i32) -> (i32, i32, i32) {
    %c0_i32 = arith.constant 0 : i32
    %c0_i32_0 = arith.constant 0 : i32
    return %arg0, %arg1, %c0_i32 : i32, i32, i32
  }
}

</mosaic_0001>

<bundles_post_ra>
// kernel: encoder_layer3.1
= control target key start
LH: loop header
LB: loop body
LE: loop exit
PB: predicated region body
PF: predicated region fallthrough
CT: control target
= control target key end

     0   :  { %s1583_s0 = inlined_call_operand.vmem [shape: bf16[2,8,32], index: 0, kind: input, shape index: {}, may-alias: {0,3}]   ;;  %s1584_s1 = inlined_call_operand.vmem [shape: bf16[2,8,32], index: 1, kind: input, shape index: {}, may-alias: {1,2}]   ;;  %s1585_s2 = inlined_call_operand.vmem [shape: bf16[2,8,32], index: 2, kind: input, shape index: {}, may-alias: {1,2}]   ;;  %s1586_s3 = inlined_call_operand.vmem [shape: bf16[2,8,32], index: 3, kind: input, shape index: {}, may-alias: {0,3}]   ;;  %s1587_s4 = inlined_call_operand.vmem [shape: bf16[32,128], index: 4, kind: input, shape index: {}]   ;;  %s1588_s5 = inlined_call_operand.vmem [shape: f32[1,128], index: 5, kind: input, shape index: {}]   ;;  %s1589_s6 = inlined_call_operand.vmem [shape: bf16[128,32], index: 6, kind: input, shape index: {}]   ;;  %s1590_s7 = inlined_call_operand.vmem [shape: f32[1,32], index: 7, kind: input, shape index: {}]   ;;  %s1591_s8 = inlined_call_operand.vmem [shape: f32[1,32], index: 8, kind: input, shape index: {}]   ;;  %s1592_s9 = inlined_call_operand.vmem [shape: f32[1,32], index: 9, kind: input, shape index: {}]   ;;  %s1593_s10 = inlined_call_operand.vmem [shape: f32[1,32], index: 10, kind: input, shape index: {}]   ;;  %s1594_s11 = inlined_call_operand.vmem [shape: f32[1,32], index: 11, kind: input, shape index: {}]   ;;  %s1595_s12 = inlined_call_operand.hbm [shape: f32[2,8,32], index: 12, kind: output, shape index: {0}]   ;;  %s1596_s13 = inlined_call_operand.hbm [shape: f32[2,8,8], index: 13, kind: output, shape index: {1}]  }
   0x1   :  { %1605 = sst [smem:[#allocation15_spill]] %s1583_s0 }
   0x2   :  { %1606 = sst [smem:[#allocation16_spill]] %s1584_s1 }
   0x3   :  { %19 = vsyncpa [#allocation3], 0 }
   0x4   :  { %21 = vsyncpa [#allocation3 + $0x1], 0 }
   0x5   :  { %22 = vsyncpa [#allocation5], 0 }
   0x6   :  { %24 = vsyncpa [#allocation5 + $0x1], 0  ;;  %s1372_s25 = smov 0   ;;  %s1374_s26 = smov 0  }
   0x7   :  { %s1376_s27 = smov 0   ;;  %s1378_s28 = smov 0  }
   0x8   :  { %s1380_s29 = smov 0   ;;  %s1382_s30 = smov 0  }
   0x9 LB: > { %1607 = sst [smem:[#allocation8_spill]] %s1279_s25  ;;  %s1036_s14 = sadd.s32 4294967295, %s1299_s30   ;;  %s1299_s30 = sphi %s1382_s30, %s30_s30   ;;  %s1295_s29 = sphi %s1380_s29, %s1625_s29   ;;  %s1291_s28 = sphi %s1378_s28, %s1624_s28   ;;  %s1287_s27 = sphi %s1376_s27, %s1623_s27   ;;  %s1283_s26 = sphi %s1374_s26, %s1627_s26   ;;  %s1279_s25 = sphi %s1372_s25, %s1626_s25  }
   0xa   : > { %1608 = sst [smem:[#allocation9_spill]] %s1287_s27  ;;  %s1037_s15 = sadd.s32 4294967294, %s1299_s30  }
   0xb   : > { %1609 = sst [smem:[#allocation10_spill]] %s1295_s29  ;;  %s42_s16 = sadd.s32 1, %s1295_s29 }
   0xc   : > { %1610 = sst [smem:[#allocation11_spill]] %s1299_s30  ;;  %s327_s17 = sadd.s32 1, %s1287_s27 }
   0xd   : > { %p44_p0 = scmp.ge.s32.totalorder %s42_s16, 2  ;;  %p337_p1 = scmp.ne.s32.totalorder %s1287_s27, %s1283_s26 }
   0xe   : > { %p338_p2 = scmp.eq.s32.totalorder %s1036_s14, 1  ;;  %p343_p3 = scmp.ne.s32.totalorder %s1283_s26, %s1279_s25 }
   0xf   : > { %s1629_s16 = smov (%p44_p0, %s42_s16), 0  ;;  %p344_p5 = scmp.eq.s32.totalorder %s1037_s15, 1 }
  0x10   : > { %1611 = sst [smem:[#allocation12_spill]] %s1629_s16  ;;  %p1412_p4 = por %p338_p2, %p337_p1 }
  0x11   : > { %s322_s19 = ssub.s32 %s1295_s29, %s1629_s16  ;;  %p1040_p6 = scmp.ge.s32.totalorder %s1299_s30, 1 }
  0x12   : > { %p325_p7 = scmp.eq.s32.totalorder %s322_s19, 0  ;;  %p1419_p8 = por %p344_p5, %p343_p3 }
  0x13   : > { %p448_p9 = scmp.lt.s32.totalorder %s1299_s30, 3 }
  0x14   : > { %s1613_s20 = scalar_select %p1419_p8, 1, 0 }
  0x15   : > { %s1425_s21 = scalar_select %p325_p7, %s1287_s27, %s327_s17  }
  0x16   : > { %1614 = sst [smem:[#allocation13_spill]] %s1613_s20  ;;  %p449_p10 = pnand %p1040_p6, %p448_p9 }
  0x17   : > { %1615 = sst [smem:[#allocation14_spill]] %s1425_s21  ;;  %p514_p11 = scmp.lt.s32.totalorder (!%p449_p10), %s1291_s28, 1 }
  0x18   : > { %452 = sbr.rel (%p449_p10) target bundleno = 1115 (0x45b), region = 68  ;;  %s1616_s0 = sld [smem:[#allocation15_spill]] (!%p449_p10) }
  0x19   : > { %s1617_s1 = sld [smem:[#allocation16_spill]] (!%p449_p10)  ;;  %s1094_s20 = sshll.u32 (!%p449_p10), %s1291_s28, 3 }
  0x1d   : > { %s515_s22 = scalar_select %p514_p11, %s1291_s28, 1  ;;  %vm547_vm0 = vcmask 261120   ;;  %vm567_vm1 = vcmask 64512   ;;  %vm627_vm2 = vcmask 1043456   ;;  %v1099_v30 = vld [vmem:[%s1587_s4 + $0x8] sm:$0xff]  ;;  %v1098_v48 = vld [vmem:[%s1587_s4] sm:$0xff] }
  0x1e   : > { %v1107_v49 = vld [vmem:[%s1589_s6 + $0x38] sm:$0xff]  ;;  %v1106_v51 = vld [vmem:[%s1589_s6 + $0x30] sm:$0xff]  ;;  %v1105_v52 = vld [vmem:[%s1589_s6 + $0x28] sm:$0xff] }
  0x1f   : > { %s1043_s23 = sshll.u32 %s515_s22, 2  ;;  %768 = vmatpush.bf16.msra.mxu3 %v1107_v49  ;;  %v1104_v53 = vld [vmem:[%s1589_s6 + $0x20] sm:$0xff]  ;;  %v1103_v54 = vld [vmem:[%s1589_s6 + $0x18] sm:$0xff]  ;;  %v1102_v56 = vld [vmem:[%s1589_s6 + $0x10] sm:$0xff] }
  0x20   : > { %s520_s15 = scalar_lea.vmem %s1616_s0, %s1043_s23  ;;  %s535_s29 = scalar_lea.vmem %s1586_s3, %s1043_s23  ;;  %v1101_v62 = vld [vmem:[%s1589_s6 + $0x8] sm:$0xff]  ;;  %v1100_v63 = vld [vmem:[%s1589_s6] sm:$0xff] }
  0x21   : > { %v540_v0 = vld [vmem:[%s535_s29] sm:$0xf]  ;;  %s527_s21 = scalar_lea.vmem %s1617_s1, %s1043_s23  ;;  %s531_s30 = scalar_lea.vmem %s1585_s2, %s1043_s23 }
  0x22   : > { %v537_v1 = vld [vmem:[%s520_s15] sm:$0xf]  ;;  %v584_v2 = vsel %vm547_vm0, %v540_v0, 0  ;;  %v628_v29 = vsel %vm627_vm2, %v540_v0, 0  ;;  %s1456_s29 = sand.u32 1, %s1283_s26   ;;  %v1301_v0 = vmov 32.0   ;;  %s887_s23 = scalar_lea.hbm %s1596_s13, %s1094_s20 }
  0x23   : > { %v538_v3 = vld [vmem:[%s527_s21] sm:$0xf]  ;;  %v1442_v5 = vunpack.c.l.bf16 %v537_v1  ;;  %593 = vmatpush.bf16.xpose.msra.mxu1 %v584_v2  ;;  %637 = vmatpush.bf16.msra.mxu2 %v628_v29  ;;  %s891_s14 = sshll.u32 %s887_s23, 4  ;;  %s861_s15 = scalar_lea.sflag [#allocation5], %s1456_s29  ;;  %s892_s14 = int_to_ptr.hbm [resolvable:$true] %s891_s14 }
  0x24   : > { %v539_v4 = vld [vmem:[%s531_s30] sm:$0xf]  ;;  %v544_v6 = vunpack.c.l.bf16 %v538_v3  ;;  %s1604_s30 = sshll.u32 %s1456_s29, 3  ;;  %769 = vmatpush.bf16.msra.mxu3 %v1106_v51  ;;  %s1203_s19 = sshra.s32 %s892_s14, 4  ;;  %s1204_s19 = int_to_ptr.hbm [resolvable:$true] %s1203_s19 }
  0x25   : > { %v552_v7 = vsel %vm547_vm0, %v539_v4, 0  ;;  %v542_v8 = vmul.f32 0.17675781, %v1442_v5  ;;  %v646_v28 = vsel %vm627_vm2, %v539_v4, 0  ;;  %s1462_s16 = scalar_lea.vmem [#allocation4], %s1604_s30  ;;  %v783_v50 = vsel %vm547_vm0, %v1442_v5, 0.0  ;;  %s1205_s17 = scalar_lea.hbm %s1204_s19, 8 }
  0x26   : > { %561 = vmatpush.bf16.xpose.msra.mxu0 %v552_v7  ;;  %v545_v9 = vmul.f32 0.17675781, %v544_v6  ;;  %784 = vadd.xlane.f32.xlu2 %v783_v50  ;;  %s889_s24 = sshll.u32 %s1462_s16, 4  ;;  %p1206_p12 = scmp.ne.s32.totalorder %s1204_s19, %s1205_s17  ;;  %s890_s24 = int_to_ptr.vmem [resolvable:$true] %s889_s24 }
  0x27   : > { %v543_v11 = vpack.c.bf16 %v542_v8, %v542_v8  ;;  %691 = vmatpush.bf16.msrb.mxu2 %v1099_v30  ;;  %s1209_s30 = scalar_lea.hbm %s1596_s13, 16  ;;  %p1210_p1 = scmp.lt.s32.totalorder %s1204_s19, %s1596_s13 }
  0x28   : > { %v546_v10 = vpack.c.bf16 %v545_v9, %v545_v9  ;;  %770 = vmatpush.bf16.msra.mxu3 %v1105_v52  ;;  %p1207_p13 = pnand %p1206_p12, %p1412_p4  ;;  %p1211_p2 = scmp.lt.s32.totalorder %s1209_s30, %s1205_s17 }
  0x2a   : > { %1048 = vmatmul.msk.bf16.vlgmr.msra.gmra.mxu1 %vm547_vm0, %v546_v10  ;;  %p1208_p0 = pneg %p1207_p13  ;;  %p1212_p3 = por %p1211_p2, %p1210_p1 }
  0x2b   : > { %692 = vmatpush.bf16.msrb.mxu2 %v1098_v48 }
  0x2c   : > { %771 = vmatpush.bf16.msra.mxu3 %v1104_v53  ;;  %p1213_p5 = pnand %p1212_p3, %p1208_p0 }
  0x2d   : > { %1047 = vmatmul.msk.bf16.vlgmr.msra.gmra.mxu0 %vm547_vm0, %v543_v11  ;;  %v1169_v11 = vld [vmem:[%s1588_s5] ss:$0 sm:$0xff] }
  0x2e   : > { %655 = vmatpush.bf16.msrb.mxu0 %v646_v28 }
  0x30   : > { %772 = vmatpush.bf16.msra.mxu3 %v1103_v54 }
  0x34   : > { %773 = vmatpush.bf16.msra.mxu3 %v1102_v56 }
  0x38   : > { %774 = vmatpush.bf16.msra.mxu3 %v1101_v62 }
  0x3c   : > { %775 = vmatpush.bf16.msra.mxu3 %v1100_v63 }
  0x99   : > { %v785_v7 = vpop.xlane.xlu2 %784 }
  0xa7   : > { %v595_v12 = vpop.f32.mrf.mxu1 }
  0xa8   : > { %v599_v13 = vsel %vm567_vm1, %v595_v12, -inf }
  0xa9   : > { %600 = vmax.xlane.f32.xlu0 %v599_v13 }
  0xaa   : > { %v563_v14 = vpop.f32.mrf.mxu0 }
  0xab   : > { %v568_v15 = vsel %vm567_vm1, %v563_v14, -inf }
  0xaf   : > { %v597_v16 = vpop.f32.mrf.mxu1 }
  0xb1   : > { %569 = vmax.xlane.f32.xlu0 %v568_v15 }
  0xb2   : > { %v565_v17 = vpop.f32.mrf.mxu0 }
 0x11c   : > { %v601_v18 = vpop.xlane.xlu0 %600 }
 0x11d   : > { %v602_v19 = vsub.f32 %v595_v12, %v601_v18  ;;  %v1170_v18 = vld [vmem:[%s1590_s7] ss:$0 sm:$0xff] }
 0x11f   : > { %v603_v20 = vmul.f32 1.442695, %v602_v19 }
 0x121   : > { %1175 = vpow2.f32 %v603_v20 }
 0x124   : > { %v570_v21 = vpop.xlane.xlu0 %569 }
 0x125   : > { %v571_v22 = vsub.f32 %v563_v14, %v570_v21 }
 0x127   : > { %v1176_v23 = vpop.eup %1175  ;;  %v572_v24 = vmul.f32 1.442695, %v571_v22 }
 0x128   : > { %v605_v25 = vsel %vm567_vm1, %v1176_v23, 0.0 }
 0x129   : > { %1177 = vpow2.f32 %v572_v24  ;;  %606 = vadd.xlane.f32.xlu1 %v605_v25 }
 0x12f   : > { %v1178_v26 = vpop.eup %1177 }
 0x130   : > { %v574_v27 = vsel %vm567_vm1, %v1178_v26, 0.0 }
 0x131   : > { %575 = vadd.xlane.f32.xlu1 %v574_v27 }
 0x19c   : > { %v607_v31 = vpop.xlane.xlu1 %606 }
 0x19d   : > { %1179 = vrcp.f32 %v607_v31  ;;  %v619_v36 = vand.u32 2147483648, %v607_v31  ;;  %v617_v38 = vand.u32 2147483647, %v607_v31  ;;  %vm613_vm4 = vweird.f32 %v607_v31 }
 0x19f   : > { %v620_v41 = vor.u32 1.1754944e-38, %v619_v36  ;;  %vm618_vm6 = vcmp.eq.f32.partialorder %v617_v38, 8.507059e+37 }
 0x1a3   : > { %v1180_v32 = vpop.eup %1179 }
 0x1a4   : > { %v609_v33 = vmul.f32 %v1180_v32, %v607_v31  ;;  %v576_v34 = vpop.xlane.xlu1 %575  ;;  %vm614_vm3 = vweird.f32 %v1180_v32 }
 0x1a5   : > { %1181 = vrcp.f32 %v576_v34  ;;  %vm615_vm5 = vmor %vm613_vm4, %vm614_vm3 }
 0x1a6   : > { %v610_v35 = vsub.f32 1.0, %v609_v33  ;;  %1183 = vrcp.f32 %v1301_v0 }
 0x1a8   : > { %v611_v37 = vmul.f32 %v1180_v32, %v610_v35 }
 0x1aa   : > { %v612_v39 = vadd.f32 %v1180_v32, %v611_v37 }
 0x1ab   : > { %v1182_v40 = vpop.eup %1181 }
 0x1ac   : > { %v578_v42 = vmul.f32 %v1182_v40, %v1178_v26  ;;  %v616_v43 = vsel %vm615_vm5, %v1180_v32, %v612_v39  ;;  %v1184_v1 = vpop.eup %1183 }
 0x1ad   : > { %v621_v44 = vsel %vm618_vm6, %v620_v41, %v616_v43  ;;  %v787_v2 = vmul.f32 32.0, %v1184_v1  ;;  %vm791_vm7 = vweird.f32 %v1184_v1 }
 0x1ae   : > { %v579_v45 = vpack.c.bf16 %v578_v42, %v578_v42  ;;  %v622_v46 = vmul.f32 %v1176_v23, %v621_v44 }
 0x1af   : > { %v788_v3 = vsub.f32 1.0, %v787_v2 }
 0x1b0   : > { %1050 = vmatmul.msk.bf16.vlgmr.msrb.gmra.mxu0 %vm567_vm1, %v579_v45  ;;  %v623_v47 = vpack.c.bf16 %v622_v46, %v622_v46  ;;  %854 = vst.msk [vmem:[%s1462_s16] sm:$0xff] %vm567_vm1, %v622_v46 }
 0x1b1   : > { %v789_v4 = vmul.f32 %v1184_v1, %v788_v3 }
 0x1b2   : > { %1049 = vmatmul.msk.bf16.vlgmr.msra.gmra.mxu2 %vm567_vm1, %v623_v47 }
 0x1b3   : > { %v790_v6 = vadd.f32 %v1184_v1, %v789_v4 }
 0x1b5   : > { %v792_v8 = vsel %vm791_vm7, %v1184_v1, %v790_v6 }
 0x1b6   : > { %v793_v9 = vmul.f32 %v792_v8, %v785_v7 }
 0x1b8   : > { %v1498_v10 = vsub.f32 %v1442_v5, %v793_v9 }
 0x1ba   : > { %v795_v12 = vmul.f32 %v1498_v10, %v1498_v10 }
 0x1bc   : > { %v796_v13 = vsel %vm547_vm0, %v795_v12, 0.0 }
 0x1bd   : > { %797 = vadd.xlane.f32.xlu0 %v796_v13 }
 0x22d   : > { %v657_v55 = vpop.f32.mrf.mxu0 }
 0x235   : > { %v639_v57 = vpop.f32.mrf.mxu2  ;;  %v659_v58 = vpop.f32.mrf.mxu0 }
 0x236   : > { %v658_v59 = vadd.f32 %v657_v55, %v639_v57 }
 0x238   : > { %v661_v60 = vpack.c.bf16 %v658_v59, %v658_v59 }
 0x23a   : > { %1059 = vmatmul.msk.bf16.vlgmr.msrb.gmra.mxu2 %vm547_vm0, %v661_v60 }
 0x23d   : > { %v641_v61 = vpop.f32.mrf.mxu2 }
 0x2bd   : > { %v694_v14 = vpop.f32.mrf.mxu2 }
 0x2be   : > { %v695_v15 = vadd.f32 %v1169_v11, %v694_v14 }
 0x2c0   : > { %v698_v16 = vmax.f32 %v695_v15, 0.0 }
 0x2c2   : > { %v699_v17 = vpack.c.bf16 %v698_v16, %v698_v16 }
 0x2c4   : > { %776 = vmatmul.bf16.vlgmr.msra.gmra.mxu3 %v699_v17 }
 0x2c5   : > { %v696_v5 = vpop.f32.mrf.mxu2 }
 0x347   : > { %v777_v19 = vpop.f32.mrf.mxu3 }
 0x348   : > { %v778_v20 = vadd.f32 %v1170_v18, %v777_v19 }
 0x34a   : > { %v822_v21 = vsel %vm547_vm0, %v778_v20, 0.0 }
 0x34b   : > { %823 = vadd.xlane.f32.xlu2 %v822_v21 }
 0x34f   : > { %v779_v22 = vpop.f32.mrf.mxu3 }
 0x3be   : > { %v824_v23 = vpop.xlane.xlu2 %823 }
 0x3bf   : > { %v825_v24 = vmul.f32 %v824_v23, %v792_v8 }
 0x3c1   : > { %v826_v25 = vsub.f32 %v778_v20, %v825_v24 }
 0x3c3   : > { %v827_v26 = vmul.f32 %v826_v25, %v826_v25 }
 0x3c5   : > { %v828_v27 = vsel %vm547_vm0, %v827_v26, 0.0 }
 0x3c6   : > { %829 = vadd.xlane.f32.xlu1 %v828_v27 }
 0x3c7   : > { %1216 = shalt.err (!%p1213_p5)
}
 0x3c8   : > { %1109 = dma.vmem_to_hbm [thread:$0]  (%p1412_p4), %s890_s24, 128, %s892_s14, %s861_s15   ;;  %v798_v28 = vpop.xlane.xlu0 %797  ;;  %v1171_v46 = vld [vmem:[%s1591_s8] ss:$0 sm:$0xff] }
 0x3c9   : > { %v799_v29 = vmul.f32 %v798_v28, %v792_v8  ;;  %v1172_v49 = vld [vmem:[%s1593_s10] ss:$0 sm:$0xff]  ;;  %s872_s19 = scalar_lea.hbm %s1595_s12, %s1094_s20  ;;  %s1618_s17 = sshll.u32 %s1456_s29, 3 }
 0x3ca   : > { %v1173_v53 = vld [vmem:[%s1592_s9] ss:$0 sm:$0xff]  ;;  %s506_s25 = scalar_lea.vmem [#allocation2], %s1618_s17  ;;  %s876_s0 = sshll.u32 %s872_s19, 4  ;;  %s877_s0 = int_to_ptr.hbm [resolvable:$true] %s876_s0 }
 0x3cb   : > { %v800_v30 = vadd.f32 1e-05, %v799_v29  ;;  %v1174_v54 = vld [vmem:[%s1594_s11] ss:$0 sm:$0xff]  ;;  %s874_s27 = sshll.u32 %s506_s25, 4  ;;  %s856_s1 = scalar_lea.sflag [#allocation3], %s1456_s29  ;;  %s875_s27 = int_to_ptr.vmem [resolvable:$true] %s874_s27 }
 0x3cc   : > { %s1231_s30 = sshra.s32 %s877_s0, 4  ;;  %s1237_s21 = scalar_lea.hbm %s1595_s12, 16  ;;  %s1232_s30 = int_to_ptr.hbm [resolvable:$true] %s1231_s30 }
 0x3cd   : > { %1185 = vrsqrt.f32 %v800_v30  ;;  %vm807_vm8 = vweird.f32 %v800_v30  ;;  %s1233_s28 = scalar_lea.hbm %s1232_s30, 8  ;;  %p1238_p10 = scmp.lt.s32.totalorder %s1232_s30, %s1595_s12 }
 0x3ce   : > { %p1234_p6 = scmp.ne.s32.totalorder %s1232_s30, %s1233_s28  ;;  %p1239_p11 = scmp.lt.s32.totalorder %s1237_s21, %s1233_s28 }
 0x3d0   : > { %p1235_p7 = pnand %p1234_p6, %p1412_p4  ;;  %p1240_p12 = por %p1239_p11, %p1238_p10 }
 0x3d2   : > { %p1236_p9 = pneg %p1235_p7 }
 0x3d3   : > { %v1186_v31 = vpop.eup %1185 }
 0x3d4   : > { %v802_v32 = vmul.f32 %v1186_v31, %v800_v30  ;;  %vm808_vm9 = vweird.f32 %v1186_v31  ;;  %p1241_p13 = pnand %p1240_p12, %p1236_p9 }
 0x3d5   : > { %vm809_vm10 = vmor %vm807_vm8, %vm808_vm9 }
 0x3d6   : > { %v803_v33 = vmul.f32 %v1186_v31, %v802_v32 }
 0x3d8   : > { %v804_v37 = vmul.f32 0.5, %v803_v33 }
 0x3da   : > { %v805_v38 = vsub.f32 1.5, %v804_v37 }
 0x3dc   : > { %v806_v40 = vmul.f32 %v1186_v31, %v805_v38 }
 0x3de   : > { %v810_v43 = vsel %vm809_vm10, %v1186_v31, %v806_v40 }
 0x3df   : > { %v811_v47 = vmul.f32 %v810_v43, %v1498_v10 }
 0x3e1   : > { %v815_v51 = vmul.f32 %v1171_v46, %v811_v47 }
 0x3e3   : > { %v819_v56 = vadd.f32 %v1173_v53, %v815_v51 }
 0x439   : > { %v830_v34 = vpop.xlane.xlu1 %829 }
 0x43a   : > { %v831_v35 = vmul.f32 %v830_v34, %v792_v8 }
 0x43c   : > { %v832_v36 = vadd.f32 1e-05, %v831_v35 }
 0x43e   : > { %1187 = vrsqrt.f32 %v832_v36  ;;  %vm839_vm12 = vweird.f32 %v832_v36 }
 0x444   : > { %v1188_v39 = vpop.eup %1187 }
 0x445   : > { %v834_v41 = vmul.f32 %v1188_v39, %v832_v36  ;;  %vm840_vm11 = vweird.f32 %v1188_v39 }
 0x446   : > { %vm841_vm13 = vmor %vm839_vm12, %vm840_vm11 }
 0x447   : > { %v835_v42 = vmul.f32 %v1188_v39, %v834_v41 }
 0x449   : > { %v836_v44 = vmul.f32 0.5, %v835_v42 }
 0x44b   : > { %v837_v45 = vsub.f32 1.5, %v836_v44 }
 0x44d   : > { %v838_v48 = vmul.f32 %v1188_v39, %v837_v45 }
 0x44f   : > { %v842_v50 = vsel %vm841_vm13, %v1188_v39, %v838_v48 }
 0x450   : > { %v843_v52 = vmul.f32 %v842_v50, %v826_v25 }
 0x452   : > { %v847_v55 = vmul.f32 %v1172_v49, %v843_v52 }
 0x454   : > { %v851_v57 = vadd.f32 %v1174_v54, %v847_v55 }
 0x456   : > { %v852_v58 = vadd.f32 %v851_v57, %v819_v56 }
 0x458   : > { %853 = vst.msk [vmem:[%s506_s25] sm:$0xff] %vm547_vm0, %v852_v58 }
 0x459   : > { %1244 = shalt.err (!%p1241_p13)
}
 0x45a   : > { %1108 = dma.vmem_to_hbm [thread:$0]  (%p1412_p4), %s875_s27, 128, %s877_s0, %s856_s1  }
 0x45b PF: > { %s1619_s29 = sld [smem:[#allocation11_spill]] }
 0x45c   : > { %s1620_s24 = sld [smem:[#allocation8_spill]] }
 0x461   : > { %p1119_p0 = scmp.ge.s32.totalorder %s1619_s29, 2 }
 0x462   : > { %s903_s15 = sand.u32 1, %s1620_s24  }
 0x463   : > { %p1113_p1 = pnand %p1119_p0, %p1419_p8  ;;  %s904_s19 = scalar_lea.sflag [#allocation3], %s903_s15 }
 0x465   : > { %p1114_p2 = pneg %p1113_p1 }
 0x467   : > { %1270 = dma.done.wait (%p1114_p2), %s904_s19, 128  }
 0x468   : > { %1272 = vsyncadd (%p1114_p2), %s904_s19, 4294967168  ;;  %s914_s17 = scalar_lea.sflag [#allocation5], %s903_s15 }
 0x469   : > { %1274 = dma.done.wait (%p1114_p2), %s914_s17, 128  }
 0x46a   : > { %1276 = vsyncadd (%p1114_p2), %s914_s17, 4294967168  ;;  %s30_s30 = sadd.s32 1, %s1619_s29   ;;  %s1622_s18 = sld [smem:[#allocation9_spill]] }
 0x46b   : > { %p27_p3 = scmp.ge.s32.totalorder %s30_s30, 4   ;;  %s1623_s27 = sld [smem:[#allocation14_spill]] }
 0x46c   : > { %s1624_s28 = sld [smem:[#allocation10_spill]]  ;;  %s1626_s25 = smov %s1283_s26 }
 0x46d   : > { %s1625_s29 = sld [smem:[#allocation12_spill]]  ;;  %29 = sbr.rel (!%p27_p3) target bundleno = 9 (0x9), region = 129 }
 0x470   : > { %s1627_s26 = smov %s1622_s18 }
 0x472   :  { %920 = vsyncpa [#allocation3], 1 }
 0x473   :  { %922 = vsyncpa [#allocation3 + $0x1], 1 }
 0x474   :  { %923 = vsyncpa [#allocation5], 1 }
 0x475   :  { %925 = vsyncpa [#allocation5 + $0x1], 1 }

</bundles_post_ra>
